<compile_context>
chip_gen: v7x
topology: tpu7x:2x2x1
jax: 0.10.0
libtpu: 0.0.40
codegen_flags: <defaults>
</compile_context>

<pallas_src>
import jax
import jax.numpy as jnp
from jax.experimental import pallas as pl
from jax.experimental.pallas import tpu as pltpu


def critic_kernel(xt_ref, w1_ref, b1_ref, w2_ref, b2_ref, wq_ref, bq_ref, qt_ref):
    # fc1: h1^T = relu(W1 @ x^T + b1)   (fc1, tm), bf16 operands, f32 accumulation.
    h1 = jnp.dot(w1_ref[...], xt_ref[...], preferred_element_type=jnp.float32)
    h1 = jnp.maximum(h1 + b1_ref[...], 0.0)
    # fc2: h2^T = relu(W2 @ h1^T + b2)  (fc2, tm)
    h2 = jnp.dot(w2_ref[...], h1.astype(w2_ref.dtype),
                 preferred_element_type=jnp.float32)
    h2 = jnp.maximum(h2 + b2_ref[...], 0.0)
    # q head (out_features == 1): VPU multiply + cross-sublane (XLU) reduction
    # -> lane-dense (1, tm) row; scalar bias read from SMEM.
    q = jnp.sum(h2 * wq_ref[...], axis=0, keepdims=True) + bq_ref[0]
    qt_ref[...] = q.astype(qt_ref.dtype)


def _round_up(x, m):
    return ((x + m - 1) // m) * m


def _pick_batch_tile(batch, tile_m):
    """Multiple-of-128 batch tile; keep >= 2 tiles when the batch allows it so the
    parallel grid axis feeds both TensorCores on v7x (negligible cost elsewhere)."""
    tm = min(_round_up(tile_m, 128), _round_up(batch, 128))
    if batch > 128 and -(-batch // tm) < 2:
        tm = _round_up(-(-batch // 2), 128)
    return tm


def critic_forward(state, action, params, *, tile_m=4096):
    """state: (B, input_dims), action: (B, n_agents*n_actions) -> q: (B, 1)."""
    w1, b1, w2, b2, wq, bq = params
    B = state.shape[0]
    fc1, d_in = w1.shape
    fc2 = w2.shape[0]

    # One-time prep (single cheap XLA op on a (B, d_in) array):
    # cat -> bf16 -> transpose so the kernel streams a (d_in, tm) lane-major tile.
    xt = jnp.concatenate([state, action], axis=1).astype(jnp.bfloat16).T  # (d_in, B)

    tm = _pick_batch_tile(B, tile_m)
    n_tiles = -(-B // tm)
    b_pad = n_tiles * tm
    if b_pad != B:
        # Batch rows are independent; padded columns are sliced off below.
        xt = jnp.pad(xt, ((0, 0), (0, b_pad - B)))

    # Weights/biases: full-extent blocks, same block every grid step -> stay
    # resident in VMEM across the whole batch sweep.
    resident = lambda shape: pl.BlockSpec(shape, lambda i, _n=len(shape): (0,) * _n)

    flops = 2 * b_pad * (d_in * fc1 + fc1 * fc2 + fc2)
    bytes_accessed = (2 * b_pad * d_in + 4 * b_pad            # bf16 input, f32 output
                      + 2 * (w1.size + w2.size)               # bf16 weights
                      + 4 * (b1.size + b2.size + wq.size + bq.size))

    qt = pl.pallas_call(
        critic_kernel,
        out_shape=jax.ShapeDtypeStruct((1, b_pad), jnp.float32),
        grid=(n_tiles,),
        in_specs=[
            pl.BlockSpec((d_in, tm), lambda i: (0, i)),           # streamed activations
            resident(w1.shape),                                   # (fc1, d_in) bf16
            resident(b1.shape),                                   # (fc1, 1)   f32
            resident(w2.shape),                                   # (fc2, fc1) bf16
            resident(b2.shape),                                   # (fc2, 1)   f32
            resident(wq.shape),                                   # (fc2, 1)   f32
            pl.BlockSpec(memory_space=pltpu.MemorySpace.SMEM),    # scalar q bias
        ],
        out_specs=pl.BlockSpec((1, tm), lambda i: (0, i)),        # lane-dense q row
        compiler_params=pltpu.CompilerParams(
            dimension_semantics=("parallel",),   # shard batch tiles across TCs (v7x)
            vmem_limit_bytes=32 * 1024 * 1024,
        ),
        cost_estimate=pl.CostEstimate(
            flops=flops, transcendentals=0, bytes_accessed=bytes_accessed),
    )(xt, w1, b1, w2, b2, wq, bq)

    return qt[0, :B].reshape(B, 1)


def init_params(key, input_dims, n_agents, n_actions, fc1_dims, fc2_dims):
    """PyTorch nn.Linear-style uniform(-1/sqrt(fan_in), 1/sqrt(fan_in)) init.

    Weights are kept in the PyTorch (out_features, in_features) layout, which is
    exactly what the transposed (features-on-sublanes) kernel consumes. Matmul
    weights are stored bf16 (MXU-native); biases and the q weight stay f32.
    """
    d_in = input_dims + n_agents * n_actions
    ks = jax.random.split(key, 6)

    def unif(k, shape, fan_in):
        bound = 1.0 / (fan_in ** 0.5)
        return jax.random.uniform(k, shape, jnp.float32, -bound, bound)

    w1 = unif(ks[0], (fc1_dims, d_in), d_in).astype(jnp.bfloat16)
    b1 = unif(ks[1], (fc1_dims, 1), d_in)
    w2 = unif(ks[2], (fc2_dims, fc1_dims), fc1_dims).astype(jnp.bfloat16)
    b2 = unif(ks[3], (fc2_dims, 1), fc1_dims)
    wq = unif(ks[4], (fc2_dims, 1), fc2_dims)    # q weight column (VPU multiply)
    bq = unif(ks[5], (1,), fc2_dims)             # q bias, scalar (SMEM)
    return w1, b1, w2, b2, wq, bq


if __name__ == "__main__":
    # Small shapes consistent with the module's constructor:
    # input_dims=16, n_agents=2, n_actions=4, fc1_dims=32, fc2_dims=32, batch=2
    batch = 2
    input_dims = 16
    n_agents = 2
    n_actions = 4
    fc1_dims = 32
    fc2_dims = 32

    key = jax.random.PRNGKey(0)
    k_state, k_action, k_params = jax.random.split(key, 3)

    state = jax.random.normal(k_state, (batch, input_dims), jnp.float32)
    action = jax.random.normal(k_action, (batch, n_agents * n_actions), jnp.float32)
    params = init_params(k_params, input_dims, n_agents, n_actions, fc1_dims, fc2_dims)

    q = jax.jit(critic_forward)(state, action, params)
    jax.block_until_ready(q)
    assert q.shape == (batch, 1)

    w1, b1, w2, b2, wq, bq = params
    x32 = jnp.concatenate([state, action], axis=1)

    # Reference 1 (tight): identical bf16-rounded operands, f32 accumulation.
    x_bf = x32.astype(jnp.bfloat16).astype(jnp.float32)
    h1 = jnp.maximum(x_bf @ w1.astype(jnp.float32).T + b1.T, 0.0)
    h1_bf = h1.astype(jnp.bfloat16).astype(jnp.float32)
    h2 = jnp.maximum(h1_bf @ w2.astype(jnp.float32).T + b2.T, 0.0)
    q_ref_bf16 = h2 @ wq + bq
    assert jnp.allclose(q, q_ref_bf16, atol=2e-3, rtol=2e-3), (q, q_ref_bf16)

    # Reference 2 (loose): full-f32 math as in the PyTorch module; only bf16
    # rounding of inputs/weights separates the kernel from it.
    h1f = jnp.maximum(x32 @ w1.astype(jnp.float32).T + b1.T, 0.0)
    h2f = jnp.maximum(h1f @ w2.astype(jnp.float32).T + b2.T, 0.0)
    q_ref_f32 = h2f @ wq + bq
    assert jnp.allclose(q, q_ref_f32, atol=5e-2, rtol=5e-2), (q, q_ref_f32)

    print("KERNEL_OK")
</pallas_src>

<mosaic_0001>
module attributes {stable_mosaic.version = 11 : i64} {
  func.func @critic_kernel(%arg0: i32, %arg1: memref<24x128xbf16, #tpu.memory_space<vmem>>, %arg2: memref<32x24xbf16, #tpu.memory_space<vmem>>, %arg3: memref<32x1xf32, #tpu.memory_space<vmem>>, %arg4: memref<32x32xbf16, #tpu.memory_space<vmem>>, %arg5: memref<32x1xf32, #tpu.memory_space<vmem>>, %arg6: memref<32x1xf32, #tpu.memory_space<vmem>>, %arg7: memref<1xf32, #tpu.memory_space<smem>>, %arg8: memref<1x128xf32, #tpu.memory_space<vmem>>) attributes {dimension_semantics = [#tpu.dimension_semantics<parallel>], iteration_bounds = array<i64: 1>, scalar_prefetch = 0 : i64, scratch_operands = 0 : i64, tpu.core_type = #tpu.core_type<tc>, window_params = [{transform_indices = @transform_0, window_bounds = array<i64: 24, 128>}, {pipeline_mode = #tpu.pipeline_mode<synchronous>, transform_indices = @transform_1, window_bounds = array<i64: 32, 24>}, {pipeline_mode = #tpu.pipeline_mode<synchronous>, transform_indices = @transform_2, window_bounds = array<i64: 32, 1>}, {pipeline_mode = #tpu.pipeline_mode<synchronous>, transform_indices = @transform_3, window_bounds = array<i64: 32, 32>}, {pipeline_mode = #tpu.pipeline_mode<synchronous>, transform_indices = @transform_4, window_bounds = array<i64: 32, 1>}, {pipeline_mode = #tpu.pipeline_mode<synchronous>, transform_indices = @transform_5, window_bounds = array<i64: 32, 1>}, {transform_indices = @transform_6, window_bounds = array<i64: 1>}, {transform_indices = @transform_7, window_bounds = array<i64: 1, 128>}]} {
    %c0 = arith.constant 0 : index
    %c0_0 = arith.constant 0 : index
    %0 = vector.load %arg2[%c0, %c0_0] : memref<32x24xbf16, #tpu.memory_space<vmem>>, vector<32x24xbf16>
    %c0_1 = arith.constant 0 : index
    %c0_2 = arith.constant 0 : index
    %1 = vector.load %arg1[%c0_1, %c0_2] : memref<24x128xbf16, #tpu.memory_space<vmem>>, vector<24x128xbf16>
    %cst = arith.constant dense<0.000000e+00> : vector<32x128xf32>
    %2 = tpu.matmul %0, %1, %cst {dimension_numbers = #tpu.dot_dimension_numbers<[1], [0], [0], [1], [0, 0, 1, 1], [], []>} : vector<32x24xbf16>, vector<24x128xbf16>, vector<32x128xf32> -> vector<32x128xf32>
    %c0_3 = arith.constant 0 : index
    %c0_4 = arith.constant 0 : index
    %3 = vector.load %arg3[%c0_3, %c0_4] : memref<32x1xf32, #tpu.memory_space<vmem>>, vector<32x1xf32>
    %4 = vector.broadcast %3 : vector<32x1xf32> to vector<32x128xf32>
    %5 = arith.addf %2, %4 : vector<32x128xf32>
    %cst_5 = arith.constant 0.000000e+00 : f32
    %6 = vector.broadcast %cst_5 : f32 to vector<32x128xf32>
    %7 = arith.maximumf %5, %6 : vector<32x128xf32>
    %c0_6 = arith.constant 0 : index
    %c0_7 = arith.constant 0 : index
    %8 = vector.load %arg4[%c0_6, %c0_7] : memref<32x32xbf16, #tpu.memory_space<vmem>>, vector<32x32xbf16>
    %9 = arith.truncf %7 : vector<32x128xf32> to vector<32x128xbf16>
    %cst_8 = arith.constant dense<0.000000e+00> : vector<32x128xf32>
    %10 = tpu.matmul %8, %9, %cst_8 {dimension_numbers = #tpu.dot_dimension_numbers<[1], [0], [0], [1], [0, 0, 1, 1], [], []>} : vector<32x32xbf16>, vector<32x128xbf16>, vector<32x128xf32> -> vector<32x128xf32>
    %c0_9 = arith.constant 0 : index
    %c0_10 = arith.constant 0 : index
    %11 = vector.load %arg5[%c0_9, %c0_10] : memref<32x1xf32, #tpu.memory_space<vmem>>, vector<32x1xf32>
    %12 = vector.broadcast %11 : vector<32x1xf32> to vector<32x128xf32>
    %13 = arith.addf %10, %12 : vector<32x128xf32>
    %cst_11 = arith.constant 0.000000e+00 : f32
    %14 = vector.broadcast %cst_11 : f32 to vector<32x128xf32>
    %15 = arith.maximumf %13, %14 : vector<32x128xf32>
    %c0_12 = arith.constant 0 : index
    %c0_13 = arith.constant 0 : index
    %16 = vector.load %arg6[%c0_12, %c0_13] : memref<32x1xf32, #tpu.memory_space<vmem>>, vector<32x1xf32>
    %17 = vector.broadcast %16 : vector<32x1xf32> to vector<32x128xf32>
    %18 = arith.mulf %15, %17 : vector<32x128xf32>
    %cst_14 = arith.constant dense<0.000000e+00> : vector<128xf32>
    %19 = vector.multi_reduction <add>, %18, %cst_14 [0] : vector<32x128xf32> to vector<128xf32>
    %20 = vector.shape_cast %19 : vector<128xf32> to vector<1x128xf32>
    %c0_15 = arith.constant 0 : index
    %21 = memref.load %arg7[%c0_15] : memref<1xf32, #tpu.memory_space<smem>>
    %22 = vector.broadcast %21 : f32 to vector<1x128xf32>
    %23 = arith.addf %20, %22 : vector<1x128xf32>
    %c0_16 = arith.constant 0 : index
    %c0_17 = arith.constant 0 : index
    %24 = vector.load %arg8[%c0_16, %c0_17] : memref<1x128xf32, #tpu.memory_space<vmem>>, vector<1x128xf32>
    tpu.vector_store %arg8[%c0_16, %c0_17], %23 {strides = array<i32>} : memref<1x128xf32, #tpu.memory_space<vmem>>, vector<1x128xf32>,
    return
  }
  func.func @transform_0(%arg0: i32) -> (i32, i32) {
    %c0_i32 = arith.constant 0 : i32
    %c0_i32_0 = arith.constant 0 : i32
    return %c0_i32, %arg0 : i32, i32
  }
  func.func @transform_1(%arg0: i32) -> (i32, i32) {
    %c0_i32 = arith.constant 0 : i32
    %c0_i32_0 = arith.constant 0 : i32
    %c0_i32_1 = arith.constant 0 : i32
    return %c0_i32, %c0_i32_0 : i32, i32
  }
  func.func @transform_2(%arg0: i32) -> (i32, i32) {
    %c0_i32 = arith.constant 0 : i32
    %c0_i32_0 = arith.constant 0 : i32
    %c0_i32_1 = arith.constant 0 : i32
    return %c0_i32, %c0_i32_0 : i32, i32
  }
  func.func @transform_3(%arg0: i32) -> (i32, i32) {
    %c0_i32 = arith.constant 0 : i32
    %c0_i32_0 = arith.constant 0 : i32
    %c0_i32_1 = arith.constant 0 : i32
    return %c0_i32, %c0_i32_0 : i32, i32
  }
  func.func @transform_4(%arg0: i32) -> (i32, i32) {
    %c0_i32 = arith.constant 0 : i32
    %c0_i32_0 = arith.constant 0 : i32
    %c0_i32_1 = arith.constant 0 : i32
    return %c0_i32, %c0_i32_0 : i32, i32
  }
  func.func @transform_5(%arg0: i32) -> (i32, i32) {
    %c0_i32 = arith.constant 0 : i32
    %c0_i32_0 = arith.constant 0 : i32
    %c0_i32_1 = arith.constant 0 : i32
    return %c0_i32, %c0_i32_0 : i32, i32
  }
  func.func @transform_6(%arg0: i32) -> i32 {
    %c0_i32 = arith.constant 0 : i32
    %c0_i32_0 = arith.constant 0 : i32
    return %c0_i32 : i32
  }
  func.func @transform_7(%arg0: i32) -> (i32, i32) {
    %c0_i32 = arith.constant 0 : i32
    %c0_i32_0 = arith.constant 0 : i32
    return %c0_i32, %arg0 : i32, i32
  }
}

</mosaic_0001>

<bundles_post_ra>
// kernel: critic_forward.1
= control target key start
LH: loop header
LB: loop body
LE: loop exit
PB: predicated region body
PF: predicated region fallthrough
CT: control target
= control target key end

     0   :  { %v331_v0 = vmov 0   ;;  %vm78_vm0 = vcmask 195584   ;;  %vm85_vm1 = vcmask 1043456   ;;  %vm182_vm2 = vcmask 261120   ;;  %s436_s0 = inlined_call_operand.vmem [shape: bf16[24,128], index: 0, kind: input, shape index: {}]   ;;  %s437_s1 = inlined_call_operand.vmem [shape: bf16[32,24], index: 1, kind: input, shape index: {}]   ;;  %s438_s2 = inlined_call_operand.vmem [shape: f32[32,1], index: 2, kind: input, shape index: {}]   ;;  %s439_s4 = inlined_call_operand.vmem [shape: f32[32,1], index: 4, kind: input, shape index: {}]   ;;  %s440_s5 = inlined_call_operand.vmem [shape: f32[32,1], index: 5, kind: input, shape index: {}]   ;;  %s441_s3 = inlined_call_operand.vmem [shape: bf16[32,32], index: 3, kind: input, shape index: {}]   ;;  %s442_s6 = inlined_call_operand.<no memory space> [shape: f32[1], index: 6, kind: input, shape index: {}]   ;;  %s443_s7 = inlined_call_operand.vmem [shape: f32[1,128], index: 7, kind: output, shape index: {}]  }
   0x1   :  { %323 = vset.pattern.permute.xlu0 %v331_v0  ;;  %324 = vset.pattern.permute.xlu1 %v331_v0  ;;  %v325_v1 = vld [vmem:[%s436_s0] sm:$0xff]   ;;  %v326_v2 = vld [vmem:[%s436_s0 + $0x8] ss:$0 sps:$4 sm:$0xff]   ;;  %v37_v5 = vld [vmem:[%s438_s2 + $0x10] sm:$0xff] }
   0x2   :  { %v327_v3 = vld [vmem:[%s437_s1] sm:$0xff]   ;;  %305 = vmatprep.subr.bf16.mxu0 %v325_v1  ;;  %v87_v6 = vsel %vm85_vm1, %v326_v2, 0  ;;  %51 = vperm.xlu1 %324, %v37_v5   ;;  %v36_v7 = vld [vmem:[%s438_s2 + $0x8] sm:$0xff]  ;;  %v38_v9 = vld [vmem:[%s438_s2 + $0x18] sm:$0xff] }
   0x3   :  { %v35_v4 = vld [vmem:[%s438_s2] sm:$0xff]  ;;  %306 = vmatpush3.bf16.msra.mxu0 %v325_v1  ;;  %309 = vmatprep.mubr.msk.bf16.mxu0 %vm78_vm0, %v327_v3  ;;  %v328_v8 = vld [vmem:[%s437_s1 + $0x8] sm:$0xff]   ;;  %v150_v12 = vld [vmem:[%s439_s4 + $0x10] sm:$0xff] }
   0x4   :  { %321 = vmatprep.subr.msk.bf16.mxu0 %vm85_vm1, %v326_v2  ;;  %41 = vperm.xlu0 %323, %v35_v4   ;;  %v148_v10 = vld [vmem:[%s439_s4] sm:$0xff]  ;;  %v149_v11 = vld [vmem:[%s439_s4 + $0x8] sm:$0xff]  ;;  %v151_v13 = vld [vmem:[%s439_s4 + $0x18] sm:$0xff] }
   0x5   :  { %v242_v14 = vld [vmem:[%s440_s5] sm:$0xff]  ;;  %v243_v15 = vld [vmem:[%s440_s5 + $0x8] sm:$0xff]  ;;  %v244_v16 = vld [vmem:[%s440_s5 + $0x10] sm:$0xff] }
   0x6   :  { %56 = vperm.xlu1 %324, %v38_v9   ;;  %v245_v17 = vld [vmem:[%s440_s5 + $0x18] sm:$0xff]  ;;  %v329_v18 = vld [vmem:[%s441_s3] sm:$0xff]   ;;  %v330_v37 = vld [vmem:[%s441_s3 + $0x8] sm:$0xff]  }
   0x7   :  { %308 = vmatpush3.bf16.msra.mxu0 %v87_v6  ;;  %317 = vmatprep.mubr.msk.bf16.mxu1 %vm182_vm2, %v329_v18  ;;  %v280_v6 = vstv %s442_s6 }
   0x8   :  { %46 = vperm.xlu0 %323, %v36_v7  }
   0xa   :  { %310 = vmatmul.mubr.msk.bf16.vlgmr.msra.gmra.mrb[0].mxu0 %vm78_vm0, %v328_v8  ;;  %159 = vperm.xlu1 %324, %v149_v11  }
   0xc   :  { %154 = vperm.xlu0 %323, %v148_v10  }
   0xe   :  { %169 = vperm.xlu1 %324, %v151_v13  }
  0x10   :  { %164 = vperm.xlu0 %323, %v150_v12  }
  0x12   :  { %253 = vperm.xlu1 %324, %v243_v15  }
  0x14   :  { %248 = vperm.xlu0 %323, %v242_v14  }
  0x16   :  { %263 = vperm.xlu1 %324, %v245_v17  }
  0x18   :  { %258 = vperm.xlu0 %323, %v244_v16  }
  0x81   :  { %v52_v19 = vpop.permute.xlu1 %51 }
  0x83   :  { %v42_v20 = vpop.permute.xlu0 %41 }
  0x85   :  { %v57_v24 = vpop.permute.xlu1 %56 }
  0x87   :  { %v47_v27 = vpop.permute.xlu0 %46 }
  0x89   :  { %v160_v39 = vpop.permute.xlu1 %159 }
  0x8b   :  { %v155_v38 = vpop.permute.xlu0 %154 }
  0x8d   :  { %v170_v41 = vpop.permute.xlu1 %169 }
  0x8f   :  { %v165_v40 = vpop.permute.xlu0 %164 }
  0x91   :  { %v254_v52 = vpop.permute.xlu1 %253 }
  0x93   :  { %v249_v47 = vpop.permute.xlu0 %248 }
  0x95   :  { %v264_v61 = vpop.permute.xlu1 %263 }
  0x97   :  { %v259_v58 = vpop.permute.xlu0 %258 }
  0xdd   :  { %v311_v21 = vpop.f32.mrb[0].mxu0 }
  0xde   :  { %v132_v22 = vadd.f32 %v311_v21, %v52_v19  ;;  %v123_v23 = vpop.f32.mrb[1].mxu0 }
  0xdf   :  { %v124_v25 = vadd.f32 %v123_v23, %v42_v20  ;;  %v312_v26 = vpop.f32.mrb[2].mxu0 }
  0xe0   :  { %v135_v28 = vadd.f32 %v312_v26, %v57_v24  ;;  %v126_v29 = vpop.f32.mrb[3].mxu0  ;;  %v140_v31 = vmax.f32 %v132_v22, 0.0 }
  0xe1   :  { %v127_v30 = vadd.f32 %v126_v29, %v47_v27  ;;  %v138_v33 = vmax.f32 %v124_v25, 0.0 }
  0xe2   :  { %v141_v32 = vmax.f32 %v135_v28, 0.0 }
  0xe3   :  { %v139_v34 = vmax.f32 %v127_v30, 0.0 }
  0xe4   :  { %v147_v35 = vpack.c.bf16 %v141_v32, %v140_v31 }
  0xe5   :  { %v146_v36 = vpack.c.bf16 %v139_v34, %v138_v33 }
  0xe7   :  { %313 = vmatprep.subr.bf16.mxu1 %v146_v36 }
  0xe8   :  { %314 = vmatpush3.bf16.msra.mxu1 %v146_v36 }
  0xe9   :  { %315 = vmatprep.subr.bf16.mxu1 %v147_v35 }
  0xec   :  { %316 = vmatpush3.bf16.msra.mxu1 %v147_v35 }
  0xef   :  { %318 = vmatmul.mubr.msk.bf16.vlgmr.msra.gmra.mrb[0].mxu1 %vm182_vm2, %v330_v37 }
 0x1c2   :  { %v319_v42 = vpop.f32.mrb[0].mxu1 }
 0x1c3   :  { %v223_v43 = vpop.f32.mrb[1].mxu1  ;;  %v232_v44 = vadd.f32 %v319_v42, %v165_v40 }
 0x1c4   :  { %v224_v45 = vadd.f32 %v223_v43, %v155_v38  ;;  %v320_v46 = vpop.f32.mrb[2].mxu1 }
 0x1c5   :  { %v226_v48 = vpop.f32.mrb[3].mxu1  ;;  %v235_v50 = vadd.f32 %v320_v46, %v170_v41  ;;  %v240_v53 = vmax.f32 %v232_v44, 0.0 }
 0x1c6   :  { %v238_v49 = vmax.f32 %v224_v45, 0.0  ;;  %v227_v51 = vadd.f32 %v226_v48, %v160_v39 }
 0x1c7   :  { %v241_v56 = vmax.f32 %v235_v50, 0.0  ;;  %v268_v59 = vmul.f32 %v259_v58, %v240_v53 }
 0x1c8   :  { %v239_v54 = vmax.f32 %v227_v51, 0.0  ;;  %v266_v55 = vmul.f32 %v249_v47, %v238_v49 }
 0x1c9   :  { %v269_v62 = vmul.f32 %v264_v61, %v241_v56 }
 0x1ca   :  { %v267_v57 = vmul.f32 %v254_v52, %v239_v54 }
 0x1cc   :  { %v270_v60 = vadd.f32 %v267_v57, %v266_v55 }
 0x1ce   :  { %v271_v63 = vadd.f32 %v270_v60, %v268_v59 }
 0x1d0   :  { %v272_v0 = vadd.f32 %v271_v63, %v269_v62 }
 0x1d2   :  { %v273_v1 = vrot.slane %v272_v0, 4 }
 0x1d4   :  { %v274_v2 = vadd.f32 %v273_v1, %v272_v0 }
 0x1d6   :  { %v275_v3 = vrot.slane %v274_v2, 2 }
 0x1d8   :  { %v276_v4 = vadd.f32 %v275_v3, %v274_v2 }
 0x1da   :  { %v277_v5 = vrot.slane %v276_v4, 1 }
 0x1dc   :  { %v278_v7 = vadd.f32 %v277_v5, %v276_v4 }
 0x1de   :  { %v281_v8 = vadd.f32 %v280_v6, %v278_v7 }
 0x1e0   :  { %282 = vst [vmem:[%s443_s7] sm:$0x1] %v281_v8 }

</bundles_post_ra>
